<compile_context>
chip_gen: v7x
topology: tpu7x:2x2x1
jax: 0.10.0
libtpu: 0.0.40
codegen_flags: <defaults>
</compile_context>

<pallas_src>
import functools

import jax
import jax.numpy as jnp
from jax.experimental import pallas as pl
from jax.experimental.pallas import tpu as pltpu

LANE = 128


def _round_up(x, m):
    return ((x + m - 1) // m) * m


@functools.lru_cache(maxsize=None)
def _tpu_config():
    """(max_tn, vmem_limit_bytes, big_vmem) derived from the TPU generation."""
    try:
        kind = jax.devices()[0].device_kind.lower()
    except Exception:
        kind = ""
    old_mxu = any(t in kind for t in ("v2", "v3", "v4", "v5"))   # 128x128 MXU parts
    big_vmem = any(t in kind for t in ("v4", "v5", "v6"))        # 128 MiB physical VMEM
    max_tn = 128 if old_mxu else 256
    vmem_limit = (96 if big_vmem else 32) * 1024 * 1024
    return max_tn, vmem_limit, big_vmem


def _compiler_params(sem):
    return pltpu.CompilerParams(dimension_semantics=sem,
                                vmem_limit_bytes=_tpu_config()[1])


# =============================================================================
# Tiled GEMM kernel:  (M,K) x (K,C) + bias  (+ReLU), K-axis reduction in VMEM.
# Used for: 7x7 s2 stem conv (im2col, Cin=1), the single 3x3 s2 conv (im2col),
# and the 1x1 shortcut convs.
# =============================================================================
def _gemm_bn_kernel(a_ref, w_ref, b_ref, o_ref, acc_ref, *, relu):
    @pl.when(pl.program_id(2) == 0)
    def _():
        acc_ref[...] = jnp.zeros_like(acc_ref)

    acc_ref[...] += jnp.dot(a_ref[...], w_ref[...],
                            preferred_element_type=jnp.float32)

    @pl.when(pl.program_id(2) == pl.num_programs(2) - 1)
    def _():
        y = acc_ref[...] + b_ref[...]
        if relu:
            y = jnp.maximum(y, 0.0)
        o_ref[...] = y.astype(o_ref.dtype)


def _gemm_bn(a, w, bias, *, relu, out_dtype=jnp.bfloat16):
    """a: (M,K), w: (K,C) (BN scale already folded), bias: (C,). C % 128 == 0."""
    max_tn, _, big_vmem = _tpu_config()
    M, K = a.shape
    C = w.shape[1]

    if M >= 512 and big_vmem:
        tm = 512
    elif M >= 256:
        tm = 256
    else:
        tm = _round_up(M, 16)
    Mp = _round_up(M, tm)
    if Mp != M:
        a = jnp.pad(a, ((0, Mp - M), (0, 0)))

    tn = min(C, max_tn)
    if C % tn:
        tn = LANE

    # Largest multiple-of-128 divisor of K (fewer K steps -> fewer acc RMWs),
    # capped to keep tiles VMEM-friendly; otherwise full-K block (e.g. K=49 stem).
    if K % LANE == 0:
        cap = 2048 if big_vmem else 1536
        tk = LANE
        for mult in range(2, cap // LANE + 1):
            cand = mult * LANE
            if cand <= K and K % cand == 0:
                tk = cand
    else:
        tk = K
    nk = K // tk

    a = a.astype(jnp.bfloat16)
    w = w.astype(jnp.bfloat16)
    b2 = bias.reshape(1, C).astype(jnp.float32)

    out = pl.pallas_call(
        functools.partial(_gemm_bn_kernel, relu=relu),
        grid=(Mp // tm, C // tn, nk),
        in_specs=[pl.BlockSpec((tm, tk), lambda i, j, k: (i, k)),
                  pl.BlockSpec((tk, tn), lambda i, j, k: (k, j)),
                  pl.BlockSpec((1, tn), lambda i, j, k: (0, j))],
        out_specs=pl.BlockSpec((tm, tn), lambda i, j, k: (i, j)),
        out_shape=jax.ShapeDtypeStruct((Mp, C), out_dtype),
        scratch_shapes=[pltpu.VMEM((tm, tn), jnp.float32)],
        compiler_params=_compiler_params(("parallel", "parallel", "arbitrary")),
    )(a, w, b2)
    return out[:M]


# =============================================================================
# Fused stride-1 3x3 conv + BN (+residual) + ReLU kernel (NHWC, no im2col).
# Wrapper flattens the zero-padded NHWC input row-major over (row, col) so each
# (ky,kx) tap is one whole-slab matmul with M = th*Wp (big, MXU-filling).
# =============================================================================
def _conv3x3_s1_kernel(*refs, wp, wo, has_res):
    if has_res:
        xm_ref, xh_ref, w_ref, b_ref, res_ref, o_ref, acc_ref = refs
    else:
        xm_ref, xh_ref, w_ref, b_ref, o_ref, acc_ref = refs
        res_ref = None

    th = o_ref.shape[1]
    m = th * wp

    # Main tile rows + 4-row halo (2 rows needed + 2 rows of slack so every tap
    # slice stays in range).  x_all is the flattened ((th+4)*wp, Cin) slab.
    x_all = jnp.concatenate([xm_ref[0], xh_ref[0]], axis=0)

    # Hoist the kx sub-lane shifts: 3 relayouts per tile instead of 9 (or 9*th).
    x_sh = (x_all, x_all[1:], x_all[2:])

    # One whole-slab matmul per tap; offsets ky*wp are 8-aligned (wp % 8 == 0).
    # Junk columns (col >= wo within each wp-wide row) are computed but never stored.
    first = True
    for ky in range(3):
        for kx in range(3):
            a = x_sh[kx][ky * wp: ky * wp + m]               # (m, Cin) bf16
            contrib = jnp.dot(a, w_ref[ky * 3 + kx],
                              preferred_element_type=jnp.float32)
            if first:
                acc_ref[...] = contrib
                first = False
            else:
                acc_ref[...] += contrib

    # Epilogue: +bias (+residual) + ReLU, lane-dense per-row stores.
    b = b_ref[...]                                           # (1, tn) f32
    for h in range(th):
        y = acc_ref[pl.ds(h * wp, wo), :] + b
        if res_ref is not None:
            y = y + res_ref[0, h].astype(jnp.float32)
        y = jnp.maximum(y, 0.0)
        o_ref[0, h] = y.astype(o_ref.dtype)


def conv3x3_s1(x, w, scale, bias, *, residual=None, out_dtype=jnp.bfloat16):
    """x: (N,H,W,Cin_pad) bf16; w: (Cout_real, Cin_real, 3, 3). ReLU always applied."""
    max_tn, _, big_vmem = _tpu_config()
    N, H, W, Cin = x.shape
    Cout_real, Cin_real = w.shape[0], w.shape[1]
    Cout = _round_up(Cout_real, LANE)
    tn = min(Cout, max_tn)
    if Cout % tn:
        tn = LANE

    # Fold BN scale, reorder to (9, Cin_pad, Cout_pad), cast to bf16.
    wr = jnp.transpose(w, (2, 3, 1, 0)) * scale.reshape(1, 1, 1, Cout_real)
    wr = jnp.pad(wr, ((0, 0), (0, 0), (0, Cin - Cin_real), (0, Cout - Cout_real)))
    wr = wr.reshape(9, Cin, Cout).astype(jnp.bfloat16)
    b = jnp.pad(bias, (0, Cout - Cout_real)).reshape(1, Cout).astype(jnp.float32)

    Ho, Wo = H, W
    if Ho >= 32 and big_vmem:
        th = 32
    elif Ho >= 16:
        th = 16
    else:
        th = _round_up(Ho, 4)
    assert th % 4 == 0                      # halo BlockSpec index math requires it
    n_h = -(-Ho // th)
    Ho_pad = n_h * th
    Wp = _round_up(W + 2, 8)                # padded width, multiple of 8 (alignment)

    # Zero padding: 1 top, (Ho_pad-Ho+3) bottom, 1 left, (Wp-W-1) right; flatten rows.
    # TODO(synk): the per-layer XLA pad (+crop) still costs ~1x activation HBM traffic;
    #             chaining pre-padded buffers between layers would remove it.
    xp = jnp.pad(x.astype(jnp.bfloat16),
                 ((0, 0), (1, Ho_pad - Ho + 3), (1, Wp - W - 1), (0, 0)))
    xf = xp.reshape(N, (Ho_pad + 4) * Wp, Cin)

    args = [xf, xf, wr, b]
    in_specs = [
        pl.BlockSpec((1, th * Wp, Cin), lambda n, i, j: (n, i, 0)),
        pl.BlockSpec((1, 4 * Wp, Cin), lambda n, i, j: (n, ((i + 1) * th) // 4, 0)),
        pl.BlockSpec((9, Cin, tn), lambda n, i, j: (0, 0, j)),
        pl.BlockSpec((1, tn), lambda n, i, j: (0, j)),
    ]
    if residual is not None:
        res = residual.astype(jnp.bfloat16)
        if Ho_pad != Ho:
            res = jnp.pad(res, ((0, 0), (0, Ho_pad - Ho), (0, 0), (0, 0)))
        args.append(res)
        in_specs.append(pl.BlockSpec((1, th, Wo, tn), lambda n, i, j: (n, i, 0, j)))

    out = pl.pallas_call(
        functools.partial(_conv3x3_s1_kernel, wp=Wp, wo=Wo,
                          has_res=residual is not None),
        grid=(N, n_h, Cout // tn),
        in_specs=in_specs,
        out_specs=pl.BlockSpec((1, th, Wo, tn), lambda n, i, j: (n, i, 0, j)),
        out_shape=jax.ShapeDtypeStruct((N, Ho_pad, Wo, Cout), out_dtype),
        scratch_shapes=[pltpu.VMEM((th * Wp, tn), jnp.float32)],
        compiler_params=_compiler_params(("parallel", "parallel", "parallel")),
    )(*args)
    if Ho_pad != Ho:
        out = out[:, :Ho]
    return out


# =============================================================================
# MaxPool 3x3 s2 p1 (NHWC).  W-direction stride-2 max fused in XLA (3 shifted
# strided slices), H-direction stride-2 max as a Pallas kernel over row tiles
# + 2-row halo, reduced entirely in bf16.
# =============================================================================
def _maxpool_h_kernel(xm_ref, xh_ref, o_ref):
    tho = o_ref.shape[1]
    x_all = jnp.concatenate([xm_ref[0], xh_ref[0]], axis=0)   # (2*tho+2, Wo, C)
    for oh in range(tho):
        r = jnp.maximum(jnp.maximum(x_all[2 * oh], x_all[2 * oh + 1]),
                        x_all[2 * oh + 2])
        o_ref[0, oh] = r


def maxpool_3x3_s2_p1_nhwc(x):
    N, H, W, C = x.shape
    Ho = (H - 1) // 2 + 1
    Wo = (W - 1) // 2 + 1
    tho = 8 if Ho >= 8 else Ho
    n_t = -(-Ho // tho)
    Ho_pad = n_t * tho

    hp = 2 * Ho_pad + 2
    wpad_r = max(1, 2 * Wo + 1 - W)
    xp = jnp.pad(x, ((0, 0), (1, hp - H - 1), (1, wpad_r), (0, 0)),
                 constant_values=-jnp.inf)

    # Column (W) direction: stride-2 max of 3 shifted views -> (N, hp, Wo, C).
    cm = jnp.maximum(
        jnp.maximum(xp[:, :, 0:2 * Wo:2, :], xp[:, :, 1:2 * Wo + 1:2, :]),
        xp[:, :, 2:2 * Wo + 2:2, :])

    out = pl.pallas_call(
        _maxpool_h_kernel,
        grid=(N, n_t),
        in_specs=[pl.BlockSpec((1, 2 * tho, Wo, C), lambda n, i: (n, i, 0, 0)),
                  pl.BlockSpec((1, 2, Wo, C), lambda n, i: (n, (i + 1) * tho, 0, 0))],
        out_specs=pl.BlockSpec((1, tho, Wo, C), lambda n, i: (n, i, 0, 0)),
        out_shape=jax.ShapeDtypeStruct((N, Ho_pad, Wo, C), x.dtype),
        compiler_params=_compiler_params(("parallel", "parallel")),
    )(cm, cm)
    if Ho_pad != Ho:
        out = out[:, :Ho]
    return out


# =============================================================================
# Conv wrappers that route through the GEMM kernel.
# =============================================================================
def conv7x7_s2_stem(x, w, scale, bias):
    """Stem conv: Cin=1, k=7, s=2, p=3. x: (N,H,W,1) f32; w: (64,1,7,7)."""
    N, H, W, _ = x.shape
    k, s, p = 7, 2, 3
    Ho = (H + 2 * p - k) // s + 1
    Wo = (W + 2 * p - k) // s + 1
    xp = jnp.pad(x, ((0, 0), (p, p), (p, p), (0, 0)))
    cols = [xp[:, ky:ky + s * Ho:s, kx:kx + s * Wo:s, 0]
            for ky in range(k) for kx in range(k)]
    a = jnp.stack(cols, axis=-1).reshape(N * Ho * Wo, k * k)        # (M, 49)

    Cout_real = w.shape[0]
    Cout = _round_up(Cout_real, LANE)
    wm = w.reshape(Cout_real, k * k).T * scale.reshape(1, Cout_real)
    wm = jnp.pad(wm, ((0, 0), (0, Cout - Cout_real)))
    b = jnp.pad(bias, (0, Cout - Cout_real))
    out = _gemm_bn(a, wm, b, relu=True)
    return out.reshape(N, Ho, Wo, Cout)


def conv3x3_s2_gemm(x, w, scale, bias, *, relu):
    """3x3 stride-2 conv via im2col GEMM. x: (N,H,W,Cin_pad) bf16."""
    # TODO(synk): could be fused (even/odd W phase split) like the stride-1 kernel;
    #             only one layer uses it, so the im2col fallback is kept for simplicity.
    N, H, W, Cin = x.shape
    Cout_real, Cin_real = w.shape[0], w.shape[1]
    Cout = _round_up(Cout_real, LANE)
    k, s, p = 3, 2, 1
    Ho = (H + 2 * p - k) // s + 1
    Wo = (W + 2 * p - k) // s + 1
    xp = jnp.pad(x, ((0, 0), (p, p), (p, p), (0, 0)))
    cols = [xp[:, ky:ky + s * Ho:s, kx:kx + s * Wo:s, :]
            for ky in range(k) for kx in range(k)]
    a = jnp.concatenate(cols, axis=-1).reshape(N * Ho * Wo, k * k * Cin)

    wr = jnp.transpose(w, (2, 3, 1, 0)) * scale.reshape(1, 1, 1, Cout_real)
    wr = jnp.pad(wr, ((0, 0), (0, 0), (0, Cin - Cin_real), (0, Cout - Cout_real)))
    wm = wr.reshape(k * k * Cin, Cout)
    b = jnp.pad(bias, (0, Cout - Cout_real))
    out = _gemm_bn(a, wm, b, relu=relu)
    return out.reshape(N, Ho, Wo, Cout)


def conv1x1_gemm(x, w, scale, bias, *, stride, relu):
    """1x1 conv (shortcut). x: (N,H,W,Cin_pad) bf16; w: (Cout,Cin,1,1)."""
    if stride > 1:
        x = x[:, ::stride, ::stride, :]
    N, Ho, Wo, Cin = x.shape
    Cout_real, Cin_real = w.shape[0], w.shape[1]
    Cout = _round_up(Cout_real, LANE)
    wm = w[:, :, 0, 0].T * scale.reshape(1, Cout_real)
    wm = jnp.pad(wm, ((0, Cin - Cin_real), (0, Cout - Cout_real)))
    b = jnp.pad(bias, (0, Cout - Cout_real))
    a = x.reshape(N * Ho * Wo, Cin)
    out = _gemm_bn(a, wm, b, relu=relu)
    return out.reshape(N, Ho, Wo, Cout)


# =============================================================================
# points -> BEV (scatter-max), kept in plain JAX.
# =============================================================================
def points_to_bev(points, point_range, batch_size, size):
    """points: (P, >=4) columns [batch_idx, x, y, z, ...] -> (B, 1, size[1], size[0])."""
    x_scale = size[0] / (point_range[3] - point_range[0])
    y_scale = size[1] / (point_range[4] - point_range[1])
    bev = jnp.full((batch_size, 1, size[1], size[0]), -10.0, dtype=jnp.float32)
    if point_range[0] == 0:
        x_pix = (points[:, 1] * x_scale).astype(jnp.int32)
    else:
        x_pix = ((points[:, 1] + (point_range[3] - point_range[0]) / 2) * x_scale).astype(jnp.int32)
    y_pix = ((points[:, 2] + (point_range[4] - point_range[1]) / 2) * y_scale).astype(jnp.int32)
    z = points[:, 3].astype(jnp.float32)
    mask = (x_pix < size[0]) & (x_pix >= 0) & (y_pix < size[1]) & (y_pix >= 0)
    b = jnp.where(mask, points[:, 0].astype(jnp.int32), 0)
    yi = jnp.where(mask, y_pix, 0)
    xi = jnp.where(mask, x_pix, 0)
    zv = jnp.where(mask, z, -jnp.inf)
    # TODO(synk): data-dependent scatter-max kept in plain JAX (no clean Pallas scatter).
    bev = bev.at[b, 0, yi, xi].max(zv)
    return bev


# =============================================================================
# Parameters (deterministic synthetic weights / BN stats, PyTorch-shaped).
# =============================================================================
def _init_conv(key, cout, cin, k):
    fan_in = cin * k * k
    return (jax.random.normal(key, (cout, cin, k, k), dtype=jnp.float32)
            / jnp.sqrt(jnp.float32(fan_in)))


def _init_bn(key, c):
    k1, k2, k3, k4 = jax.random.split(key, 4)
    gamma = jax.random.uniform(k1, (c,), minval=0.5, maxval=1.5)
    beta = jax.random.normal(k2, (c,)) * 0.1
    mean = jax.random.normal(k3, (c,)) * 0.1
    var = jax.random.uniform(k4, (c,), minval=0.5, maxval=1.5)
    eps = 1e-5
    scale = gamma / jnp.sqrt(var + eps)
    bias = beta - mean * scale
    return scale.astype(jnp.float32), bias.astype(jnp.float32)


def _make_basic_block(key, cin, cout, stride):
    keys = jax.random.split(key, 6)
    p = {
        "w1": _init_conv(keys[0], cout, cin, 3),
        "bn1": _init_bn(keys[1], cout),
        "w2": _init_conv(keys[2], cout, cout, 3),
        "bn2": _init_bn(keys[3], cout),
        "stride": stride,
    }
    if stride != 1 or cin != cout:      # expansion == 1
        p["ws"] = _init_conv(keys[4], cout, cin, 1)
        p["bns"] = _init_bn(keys[5], cout)
    return p


def init_params(key):
    keys = jax.random.split(key, 16)
    params = {"conv1_w": _init_conv(keys[0], 64, 1, 7), "bn1": _init_bn(keys[1], 64)}
    blocks = []
    in_c = 64
    ki = 2
    # _make_layer(64, 2, stride=1), (128, 2, stride=2), (256, 2, stride=1)
    for out_c, num, stride in [(64, 2, 1), (128, 2, 2), (256, 2, 1)]:
        strides = [stride] + [1] * (num - 1)
        for s in strides:
            blocks.append(_make_basic_block(keys[ki], in_c, out_c, s))
            in_c = out_c
            ki += 1
    params["blocks"] = blocks
    return params


# =============================================================================
# Model forward (NHWC internally, bf16 activations, lane-padded channels).
# =============================================================================
def basic_block_forward(x, p):
    stride = p["stride"]
    if stride == 1:
        out = conv3x3_s1(x, p["w1"], *p["bn1"])                       # conv+BN+ReLU fused
    else:
        out = conv3x3_s2_gemm(x, p["w1"], *p["bn1"], relu=True)
    if "ws" in p:
        sc = conv1x1_gemm(x, p["ws"], *p["bns"], stride=stride, relu=False)
    else:
        sc = x
    # second conv: conv + BN + residual add + ReLU, all fused in one Pallas kernel
    out = conv3x3_s1(out, p["w2"], *p["bn2"], residual=sc)
    return out


def bev_conv_res_ts_forward(params, points, batch_size, point_range, size):
    bev = points_to_bev(points, point_range, batch_size, size)        # (B,1,Sy,Sx) f32
    x = jnp.transpose(bev, (0, 2, 3, 1))                              # NHWC, once at entry
    x = conv7x7_s2_stem(x, params["conv1_w"], *params["bn1"])         # (B,Sy/2,Sx/2,128) bf16
    x = maxpool_3x3_s2_p1_nhwc(x)                                     # (B,Sy/4,Sx/4,128)
    for p in params["blocks"]:
        x = basic_block_forward(x, p)
    x = x[..., :256]                                                  # strip lane padding
    x = jnp.transpose(x, (0, 3, 1, 2)).astype(jnp.float32)            # NCHW, once at exit
    return bev, x        # x == batch_dict['spatial_features']


# =============================================================================
# main
# =============================================================================
if __name__ == "__main__":
    key = jax.random.PRNGKey(0)
    pts_key, param_key = jax.random.split(key)

    point_range = (0.0, -40.0, -3.0, 70.4, 40.0, 1.0)
    size = (32, 32)          # (Sx, Sy) -- kept small for the example
    batch_size = 2
    n_pts = 512

    k1, k2, k3, k4 = jax.random.split(pts_key, 4)
    b_idx = jax.random.randint(k1, (n_pts, 1), 0, batch_size).astype(jnp.float32)
    xs = jax.random.uniform(k2, (n_pts, 1), minval=0.0, maxval=70.4)
    ys = jax.random.uniform(k3, (n_pts, 1), minval=-40.0, maxval=40.0)
    zs = jax.random.uniform(k4, (n_pts, 1), minval=-3.0, maxval=1.0)
    points = jnp.concatenate([b_idx, xs, ys, zs], axis=1)    # (P, 4): [b, x, y, z]

    params = init_params(param_key)

    bev, spatial_features = bev_conv_res_ts_forward(
        params, points, batch_size, point_range, size)
    spatial_features = jax.block_until_ready(spatial_features)

    assert bev.shape == (batch_size, 1, size[1], size[0])
    # 32 -> conv7 s2 -> 16 -> maxpool s2 -> 8 -> layer2 s2 -> 4 ; 256 channels
    assert spatial_features.shape == (batch_size, 256, size[1] // 8, size[0] // 8)
    assert spatial_features.dtype == jnp.float32
    assert bool(jnp.all(jnp.isfinite(spatial_features)))

    print("KERNEL_OK")
</pallas_src>

<mosaic_0001>
module attributes {stable_mosaic.version = 11 : i64} {
  func.func @_gemm_bn_kernel(%arg0: i32, %arg1: i32, %arg2: i32, %arg3: memref<256x49xbf16, #tpu.memory_space<vmem>>, %arg4: memref<49x128xbf16, #tpu.memory_space<vmem>>, %arg5: memref<1x128xf32, #tpu.memory_space<vmem>>, %arg6: memref<256x128xbf16, #tpu.memory_space<vmem>>, %arg7: memref<256x128xf32, #tpu.memory_space<vmem>>) attributes {dimension_semantics = [#tpu.dimension_semantics<parallel>, #tpu.dimension_semantics<parallel>, #tpu.dimension_semantics<arbitrary>], iteration_bounds = array<i64: 2, 1, 1>, scalar_prefetch = 0 : i64, scratch_operands = 1 : i64, tpu.core_type = #tpu.core_type<tc>, window_params = [{transform_indices = @transform_0, window_bounds = array<i64: 256, 49>}, {transform_indices = @transform_1, window_bounds = array<i64: 49, 128>}, {transform_indices = @transform_2, window_bounds = array<i64: 1, 128>}, {transform_indices = @transform_3, window_bounds = array<i64: 256, 128>}]} {
    %c0_i32 = arith.constant 0 : i32
    %0 = arith.cmpi eq, %arg2, %c0_i32 : i32
    %1 = arith.extui %0 : i1 to i32
    %c0_i32_0 = arith.constant 0 : i32
    %2 = arith.cmpi ne, %1, %c0_i32_0 : i32
    scf.if %2 {
      %cst_10 = arith.constant 0.000000e+00 : f32
      %12 = vector.broadcast %cst_10 : f32 to vector<256x128xf32>
      %c0_11 = arith.constant 0 : index
      %c0_12 = arith.constant 0 : index
      %13 = vector.load %arg7[%c0_11, %c0_12] : memref<256x128xf32, #tpu.memory_space<vmem>>, vector<256x128xf32>
      tpu.vector_store %arg7[%c0_11, %c0_12], %12 {strides = array<i32>} : memref<256x128xf32, #tpu.memory_space<vmem>>, vector<256x128xf32>,
    } else {
    }
    %c0 = arith.constant 0 : index
    %c0_1 = arith.constant 0 : index
    %3 = vector.load %arg7[%c0, %c0_1] : memref<256x128xf32, #tpu.memory_space<vmem>>, vector<256x128xf32>
    %c0_2 = arith.constant 0 : index
    %c0_3 = arith.constant 0 : index
    %4 = vector.load %arg3[%c0_2, %c0_3] : memref<256x49xbf16, #tpu.memory_space<vmem>>, vector<256x49xbf16>
    %c0_4 = arith.constant 0 : index
    %c0_5 = arith.constant 0 : index
    %5 = vector.load %arg4[%c0_4, %c0_5] : memref<49x128xbf16, #tpu.memory_space<vmem>>, vector<49x128xbf16>
    %cst = arith.constant dense<0.000000e+00> : vector<256x128xf32>
    %6 = tpu.matmul %4, %5, %cst {dimension_numbers = #tpu.dot_dimension_numbers<[1], [0], [0], [1], [0, 0, 1, 1], [], []>} : vector<256x49xbf16>, vector<49x128xbf16>, vector<256x128xf32> -> vector<256x128xf32>
    %7 = arith.addf %3, %6 : vector<256x128xf32>
    %c0_6 = arith.constant 0 : index
    %c0_7 = arith.constant 0 : index
    %8 = vector.load %arg7[%c0_6, %c0_7] : memref<256x128xf32, #tpu.memory_space<vmem>>, vector<256x128xf32>
    tpu.vector_store %arg7[%c0_6, %c0_7], %7 {strides = array<i32>} : memref<256x128xf32, #tpu.memory_space<vmem>>, vector<256x128xf32>,
    %c0_i32_8 = arith.constant 0 : i32
    %9 = arith.cmpi eq, %arg2, %c0_i32_8 : i32
    %10 = arith.extui %9 : i1 to i32
    %c0_i32_9 = arith.constant 0 : i32
    %11 = arith.cmpi ne, %10, %c0_i32_9 : i32
    scf.if %11 {
      %c0_10 = arith.constant 0 : index
      %c0_11 = arith.constant 0 : index
      %12 = vector.load %arg7[%c0_10, %c0_11] : memref<256x128xf32, #tpu.memory_space<vmem>>, vector<256x128xf32>
      %c0_12 = arith.constant 0 : index
      %c0_13 = arith.constant 0 : index
      %13 = vector.load %arg5[%c0_12, %c0_13] : memref<1x128xf32, #tpu.memory_space<vmem>>, vector<1x128xf32>
      %14 = vector.broadcast %13 : vector<1x128xf32> to vector<256x128xf32>
      %15 = arith.addf %12, %14 : vector<256x128xf32>
      %cst_14 = arith.constant 0.000000e+00 : f32
      %16 = vector.broadcast %cst_14 : f32 to vector<256x128xf32>
      %17 = arith.maximumf %15, %16 : vector<256x128xf32>
      %18 = arith.truncf %17 : vector<256x128xf32> to vector<256x128xbf16>
      %c0_15 = arith.constant 0 : index
      %c0_16 = arith.constant 0 : index
      %19 = vector.load %arg6[%c0_15, %c0_16] : memref<256x128xbf16, #tpu.memory_space<vmem>>, vector<256x128xbf16>
      tpu.vector_store %arg6[%c0_15, %c0_16], %18 {strides = array<i32>} : memref<256x128xbf16, #tpu.memory_space<vmem>>, vector<256x128xbf16>,
    } else {
    }
    return
  }
  func.func @transform_0(%arg0: i32, %arg1: i32, %arg2: i32) -> (i32, i32) {
    %c0_i32 = arith.constant 0 : i32
    return %arg0, %arg2 : i32, i32
  }
  func.func @transform_1(%arg0: i32, %arg1: i32, %arg2: i32) -> (i32, i32) {
    %c0_i32 = arith.constant 0 : i32
    return %arg2, %arg1 : i32, i32
  }
  func.func @transform_2(%arg0: i32, %arg1: i32, %arg2: i32) -> (i32, i32) {
    %c0_i32 = arith.constant 0 : i32
    %c0_i32_0 = arith.constant 0 : i32
    return %c0_i32, %arg1 : i32, i32
  }
  func.func @transform_3(%arg0: i32, %arg1: i32, %arg2: i32) -> (i32, i32) {
    %c0_i32 = arith.constant 0 : i32
    return %arg0, %arg1 : i32, i32
  }
}

</mosaic_0001>

<bundles_post_ra>
// kernel: tpu_custom_call.1
= control target key start
LH: loop header
LB: loop body
LE: loop exit
PB: predicated region body
PF: predicated region fallthrough
CT: control target
= control target key end

     0   :  { %8 = vsyncpa [#allocation4], 0  ;;  %s1811_s0 = inlined_call_operand.vmem [shape: bf16[512,49], index: 0, kind: input, shape index: {}]   ;;  %s1812_s1 = inlined_call_operand.vmem [shape: bf16[49,128], index: 1, kind: input, shape index: {}]   ;;  %s1813_s2 = inlined_call_operand.vmem [shape: f32[1,128], index: 2, kind: input, shape index: {}]   ;;  %s1814_s3 = inlined_call_operand.hbm [shape: bf16[512,128], index: 3, kind: output, shape index: {}]  }
   0x1   :  { %10 = vsyncpa [#allocation4 + $0x1], 0  ;;  %s1591_s12 = smov 0   ;;  %s1593_s13 = smov 0  }
   0x2   :  { %s1595_s14 = smov 0   ;;  %s1597_s15 = smov 0  }
   0x3   :  { %s1599_s16 = smov 0   ;;  %s1601_s17 = smov 0  }
   0x4 LB: > { %s1129_s18 = sadd.s32 4294967295, %s1565_s17   ;;  %s1130_s19 = sadd.s32 4294967294, %s1565_s17   ;;  %s1565_s17 = sphi %s1601_s17, %s16_s17   ;;  %s1561_s16 = sphi %s1599_s16, %s1821_s16   ;;  %s1557_s15 = sphi %s1597_s15, %s1820_s15   ;;  %s1553_s14 = sphi %s1595_s14, %s1819_s14   ;;  %s1549_s13 = sphi %s1593_s13, %s1818_s13   ;;  %s1545_s12 = sphi %s1591_s12, %s1817_s12  }
   0x5   : > { %s35_s20 = sadd.s32 1, %s1561_s16  ;;  %s126_s21 = sadd.s32 1, %s1553_s14 }
   0x6   : > { %p37_p0 = scmp.ge.s32.totalorder %s35_s20, 2  ;;  %p136_p1 = scmp.ne.s32.totalorder %s1553_s14, %s1549_s13 }
   0x7   : > { %p137_p2 = scmp.eq.s32.totalorder %s1129_s18, 1  ;;  %p142_p3 = scmp.ne.s32.totalorder %s1549_s13, %s1545_s12 }
   0x8   : > { %s1823_s20 = smov (%p37_p0, %s35_s20), 0  ;;  %p143_p5 = scmp.eq.s32.totalorder %s1130_s19, 1 }
   0x9   : > { %p1631_p4 = por %p137_p2, %p136_p1  ;;  %s121_s23 = ssub.s32 %s1561_s16, %s1823_s20 }
   0xa   : > { %p1135_p6 = scmp.ge.s32.totalorder %s1565_s17, 1  ;;  %p124_p7 = scmp.eq.s32.totalorder %s121_s23, 0 }
   0xb   : > { %p1638_p8 = por %p143_p5, %p142_p3  ;;  %p191_p9 = scmp.lt.s32.totalorder %s1565_s17, 3 }
   0xc   : > { %s1644_s25 = scalar_select %p124_p7, %s1553_s14, %s126_s21  }
   0xd   : > { %p192_p10 = pnand %p1135_p6, %p191_p9 }
   0xe   : > { %v1467_v0 = vld [vmem:[%s1812_s1] sm:$0xff] (!%p192_p10)   ;;  %v1468_v1 = vld [vmem:[%s1812_s1 + $0x8] sm:$0xff] (!%p192_p10)   ;;  %vm509_vm0 = vcmask (!%p192_p10), 1040384   ;;  %s1137_s30 = sshll.u32 (!%p192_p10), %s1557_s15, 5  ;;  %v1469_v2 = vld [vmem:[%s1812_s1 + $0x10] sm:$0xff] (!%p192_p10)   ;;  %v1567_v4 = vmov (!%p192_p10), 0  }
   0xf   : > { %195 = sbr.rel (%p192_p10) target bundleno = 291 (0x123), region = 32  ;;  %1361 = vmatprep.subr.bf16.mxu0 (!%p192_p10), %v1467_v0  ;;  %1401 = vmatprep.subr.bf16.mxu1 (!%p192_p10), %v1467_v0  ;;  %v1470_v3 = vld [vmem:[%s1812_s1 + $0x18] ss:$0 sps:$4 sm:$0x11] (!%p192_p10)   ;;  %p230_p11 = scmp.lt.s32.totalorder (!%p192_p10), %s1137_s30, 63  ;;  %v511_v5 = vsel (!%p192_p10), %vm509_vm0, 65535, %v1567_v4 }
  0x10   : > { %1362 = vmatpush3.bf16.msra.mxu0 (!%p192_p10), %v1467_v0  ;;  %1405 = vmatpush3.bf16.msra.mxu1 (!%p192_p10), %v1467_v0  ;;  %v513_v6 = vand.u32 (!%p192_p10), %v1470_v3, %v511_v5  ;;  %vm460_vm1 = vcmask (!%p192_p10), 400384   ;;  %v1699_v23 = vld [vmem:[%s1813_s2] ss:$0 sm:$0xff] (!%p192_p10)  ;;  %s226_s21 = sand.u32 (!%p192_p10), 1, %s1549_s13   ;;  %s1245_s27 = sshll.u32 (!%p192_p10), %s1557_s15, 11 }
  0x11   : > { %1363 = vmatprep.subr.bf16.mxu0 (!%p192_p10), %v1468_v1  ;;  %1402 = vmatprep.subr.bf16.mxu1 (!%p192_p10), %v1468_v1  ;;  %s1136_s23 = sshll.u32 (!%p192_p10), %s226_s21, 7  ;;  %s1755_s15 = scalar_lea.hbm (!%p192_p10), %s1814_s3, %s1245_s27 }
  0x12   : > { %s1712_s26 = scalar_lea.vmem (!%p192_p10), [#allocation3], %s1136_s23  ;;  %s1765_s4 = scalar_lea.sflag (!%p192_p10), [#allocation4], %s226_s21 }
  0x13   : > { %s1021_s28 = sshll.u32 (!%p192_p10), %s1712_s26, 4  ;;  %s1568_s6 = smov (!%p192_p10), [#allocation3]   ;;  %s1757_s28 = int_to_ptr.vmem [resolvable:$true] %s1021_s28 }
  0x14   : > { %1364 = vmatpush3.bf16.msra.mxu0 (!%p192_p10), %v1468_v1  ;;  %1406 = vmatpush3.bf16.msra.mxu1 (!%p192_p10), %v1468_v1  ;;  %s1487_s5 = scalar_lea.vmem (!%p192_p10), %s1757_s28, 2048  ;;  %s1491_s7 = sshll.u32 (!%p192_p10), %s1568_s6, 4  ;;  %s1492_s7 = int_to_ptr.vmem [resolvable:$false] %s1491_s7 }
  0x15   : > { %1365 = vmatprep.subr.bf16.mxu0 (!%p192_p10), %v1469_v2  ;;  %1403 = vmatprep.subr.bf16.mxu1 (!%p192_p10), %v1469_v2  ;;  %p1488_p12 = scmp.ne.s32.totalorder (!%p192_p10), %s1757_s28, %s1487_s5  ;;  %p1494_p1 = scmp.lt.s32.totalorder (!%p192_p10), %s1757_s28, %s1492_s7 }
  0x16   : > { %s1825_s30 = smov (!%p230_p11, %s1137_s30), 63 }
  0x17   : > { %s1138_s8 = sshll.u32 %s1825_s30, 2  ;;  %p1489_p13 = pnand %p1488_p12, %p1631_p4 }
  0x18   : > { %s1662_s11 = scalar_lea.vmem %s1811_s0, %s1138_s8  ;;  %1366 = vmatpush3.bf16.msra.mxu0 %v1469_v2  ;;  %1407 = vmatpush3.bf16.msra.mxu1 %v1469_v2  ;;  %s1493_s8 = scalar_lea.vmem %s1492_s7, 4096 }
  0x19   : > { %v1471_v7 = vld [vmem:[%s1662_s11] sm:$0xff]   ;;  %1367 = vmatprep.subr.bf16.mxu0 %v513_v6  ;;  %1404 = vmatprep.subr.bf16.mxu1 %v513_v6  ;;  %v1473_v9 = vld [vmem:[%s1662_s11 + $0x8] sm:$0xff]   ;;  %v1475_v11 = vld [vmem:[%s1662_s11 + $0x10] sm:$0xff]   ;;  %p1490_p0 = pneg %p1489_p13  ;;  %p1495_p2 = scmp.lt.s32.totalorder %s1493_s8, %s1487_s5 }
  0x1a   : > { %v1472_v8 = vld [vmem:[%s1662_s11 + $0x40] sm:$0xff]   ;;  %1369 = vmatprep.mubr.msk.bf16.mxu0 %vm460_vm1, %v1471_v7  ;;  %v1474_v10 = vld [vmem:[%s1662_s11 + $0x48] sm:$0xff]   ;;  %v1476_v12 = vld [vmem:[%s1662_s11 + $0x50] sm:$0xff]  }
  0x1b   : > { %1385 = vmatprep.mubr.msk.bf16.mxu1 %vm460_vm1, %v1472_v8  ;;  %v1477_v13 = vld [vmem:[%s1662_s11 + $0x18] sm:$0xff]   ;;  %v1479_v15 = vld [vmem:[%s1662_s11 + $0x20] sm:$0xff]   ;;  %v1481_v17 = vld [vmem:[%s1662_s11 + $0x28] sm:$0xff]   ;;  %p1496_p3 = por %p1495_p2, %p1494_p1 }
  0x1c   : > { %1368 = vmatpush3.bf16.msra.mxu0 %v513_v6  ;;  %1408 = vmatpush3.bf16.msra.mxu1 %v513_v6  ;;  %v1478_v14 = vld [vmem:[%s1662_s11 + $0x58] sm:$0xff]   ;;  %v1480_v16 = vld [vmem:[%s1662_s11 + $0x60] sm:$0xff]   ;;  %v1482_v18 = vld [vmem:[%s1662_s11 + $0x68] sm:$0xff]  }
  0x1d   : > { %v1483_v19 = vld [vmem:[%s1662_s11 + $0x30] sm:$0xff]   ;;  %v1485_v21 = vld [vmem:[%s1662_s11 + $0x38] sm:$0xff]   ;;  %p1497_p5 = pnand %p1496_p3, %p1490_p0 }
  0x1e   : > { %v1484_v20 = vld [vmem:[%s1662_s11 + $0x70] sm:$0xff]   ;;  %v1486_v22 = vld [vmem:[%s1662_s11 + $0x78] sm:$0xff]  }
  0x1f   : > { %1370 = vmatmul.mubr.msk.bf16.vlgmr.msra.gmra.mrb[0].mxu0 %vm460_vm1, %v1473_v9  ;;  %1386 = vmatmul.mubr.msk.bf16.vlgmr.msra.gmra.mrb[0].mxu1 %vm460_vm1, %v1474_v10 }
  0x20   : > { %1373 = vmatprep.mubr.msk.bf16.mxu0 %vm460_vm1, %v1475_v11  ;;  %1389 = vmatprep.mubr.msk.bf16.mxu1 %vm460_vm1, %v1476_v12 }
  0x27   : > { %1374 = vmatmul.mubr.msk.bf16.gmra.mrb[4].mxu0 %vm460_vm1, %v1477_v13  ;;  %1390 = vmatmul.mubr.msk.bf16.gmra.mrb[4].mxu1 %vm460_vm1, %v1478_v14 }
  0x28   : > { %1377 = vmatprep.mubr.msk.bf16.mxu0 %vm460_vm1, %v1479_v15  ;;  %1393 = vmatprep.mubr.msk.bf16.mxu1 %vm460_vm1, %v1480_v16 }
  0x2f   : > { %1378 = vmatmul.mubr.msk.bf16.gmra.mrb[8].mxu0 %vm460_vm1, %v1481_v17  ;;  %1394 = vmatmul.mubr.msk.bf16.gmra.mrb[8].mxu1 %vm460_vm1, %v1482_v18 }
  0x30   : > { %1381 = vmatprep.mubr.msk.bf16.mxu0 %vm460_vm1, %v1483_v19  ;;  %1397 = vmatprep.mubr.msk.bf16.mxu1 %vm460_vm1, %v1484_v20 }
  0x37   : > { %1382 = vmatmul.mubr.msk.bf16.gmra.mrb[12].mxu0 %vm460_vm1, %v1485_v21  ;;  %1398 = vmatmul.mubr.msk.bf16.gmra.mrb[12].mxu1 %vm460_vm1, %v1486_v22 }
  0xf2   : > { %v1371_v24 = vpop.f32.mrb[0].mxu0  ;;  %v1387_v25 = vpop.f32.mrb[0].mxu1 }
  0xf3   : > { %v784_v26 = vadd.f32 %v1371_v24, %v1699_v23  ;;  %v800_v27 = vadd.f32 %v1387_v25, %v1699_v23  ;;  %v549_v28 = vpop.f32.mrb[1].mxu0  ;;  %v613_v29 = vpop.f32.mrb[1].mxu1 }
  0xf4   : > { %v782_v30 = vadd.f32 %v1699_v23, %v549_v28  ;;  %v798_v31 = vadd.f32 %v1699_v23, %v613_v29  ;;  %v1372_v32 = vpop.f32.mrb[2].mxu0  ;;  %v1388_v33 = vpop.f32.mrb[2].mxu1 }
  0xf5   : > { %v785_v34 = vadd.f32 %v1372_v32, %v1699_v23  ;;  %v801_v35 = vadd.f32 %v1388_v33, %v1699_v23  ;;  %v552_v36 = vpop.f32.mrb[3].mxu0  ;;  %v616_v37 = vpop.f32.mrb[3].mxu1  ;;  %v816_v40 = vmax.f32 %v784_v26, 0.0  ;;  %v832_v41 = vmax.f32 %v800_v27, 0.0 }
  0xf6   : > { %v783_v38 = vadd.f32 %v1699_v23, %v552_v36  ;;  %v799_v39 = vadd.f32 %v1699_v23, %v616_v37  ;;  %v814_v44 = vmax.f32 %v782_v30, 0.0  ;;  %v830_v45 = vmax.f32 %v798_v31, 0.0 }
  0xf7   : > { %v817_v42 = vmax.f32 %v785_v34, 0.0  ;;  %v833_v43 = vmax.f32 %v801_v35, 0.0 }
  0xf8   : > { %v815_v46 = vmax.f32 %v783_v38, 0.0  ;;  %v831_v47 = vmax.f32 %v799_v39, 0.0 }
  0xf9   : > { %v1254_v48 = vpack.c.bf16 %v817_v42, %v816_v40  ;;  %v1294_v49 = vpack.c.bf16 %v833_v43, %v832_v41 }
  0xfa   : > { %v1249_v50 = vpack.c.bf16 %v815_v46, %v814_v44  ;;  %v1289_v51 = vpack.c.bf16 %v831_v47, %v830_v45  ;;  %v1375_v52 = vpop.f32.mrb[4].mxu0  ;;  %v1391_v53 = vpop.f32.mrb[4].mxu1 }
  0xfb   : > { %1326 = vst [vmem:[%s1712_s26 + $0x8] sm:$0xff] %v1254_v48   ;;  %1334 = vst [vmem:[%s1712_s26 + $0x48] sm:$0xff] %v1294_v49   ;;  %v788_v54 = vadd.f32 %v1375_v52, %v1699_v23  ;;  %v804_v55 = vadd.f32 %v1391_v53, %v1699_v23  ;;  %v565_v56 = vpop.f32.mrb[5].mxu0  ;;  %v629_v57 = vpop.f32.mrb[5].mxu1 }
  0xfc   : > { %1250 = vst [vmem:[%s1712_s26] sm:$0xff] %v1249_v50   ;;  %1333 = vst [vmem:[%s1712_s26 + $0x40] sm:$0xff] %v1289_v51   ;;  %v786_v58 = vadd.f32 %v1699_v23, %v565_v56  ;;  %v802_v59 = vadd.f32 %v1699_v23, %v629_v57  ;;  %v1376_v60 = vpop.f32.mrb[6].mxu0  ;;  %v1392_v61 = vpop.f32.mrb[6].mxu1 }
  0xfd   : > { %v789_v62 = vadd.f32 %v1376_v60, %v1699_v23  ;;  %v805_v63 = vadd.f32 %v1392_v61, %v1699_v23  ;;  %v568_v0 = vpop.f32.mrb[7].mxu0  ;;  %v632_v1 = vpop.f32.mrb[7].mxu1  ;;  %v820_v4 = vmax.f32 %v788_v54, 0.0  ;;  %v836_v5 = vmax.f32 %v804_v55, 0.0 }
  0xfe   : > { %v787_v2 = vadd.f32 %v1699_v23, %v568_v0  ;;  %v803_v3 = vadd.f32 %v1699_v23, %v632_v1  ;;  %v818_v8 = vmax.f32 %v786_v58, 0.0  ;;  %v834_v9 = vmax.f32 %v802_v59, 0.0 }
  0xff   : > { %v821_v6 = vmax.f32 %v789_v62, 0.0  ;;  %v837_v7 = vmax.f32 %v805_v63, 0.0 }
 0x100   : > { %v819_v10 = vmax.f32 %v787_v2, 0.0  ;;  %v835_v11 = vmax.f32 %v803_v3, 0.0 }
 0x101   : > { %v1264_v12 = vpack.c.bf16 %v821_v6, %v820_v4  ;;  %v1304_v13 = vpack.c.bf16 %v837_v7, %v836_v5 }
 0x102   : > { %v1259_v14 = vpack.c.bf16 %v819_v10, %v818_v8  ;;  %v1299_v15 = vpack.c.bf16 %v835_v11, %v834_v9  ;;  %v1379_v16 = vpop.f32.mrb[8].mxu0  ;;  %v1395_v17 = vpop.f32.mrb[8].mxu1 }
 0x103   : > { %1328 = vst [vmem:[%s1712_s26 + $0x18] sm:$0xff] %v1264_v12   ;;  %1336 = vst [vmem:[%s1712_s26 + $0x58] sm:$0xff] %v1304_v13   ;;  %v792_v18 = vadd.f32 %v1379_v16, %v1699_v23  ;;  %v808_v19 = vadd.f32 %v1395_v17, %v1699_v23  ;;  %v581_v20 = vpop.f32.mrb[9].mxu0  ;;  %v645_v21 = vpop.f32.mrb[9].mxu1 }
 0x104   : > { %1327 = vst [vmem:[%s1712_s26 + $0x10] sm:$0xff] %v1259_v14   ;;  %1335 = vst [vmem:[%s1712_s26 + $0x50] sm:$0xff] %v1299_v15   ;;  %v790_v22 = vadd.f32 %v1699_v23, %v581_v20  ;;  %v806_v24 = vadd.f32 %v1699_v23, %v645_v21  ;;  %v1380_v25 = vpop.f32.mrb[10].mxu0  ;;  %v1396_v26 = vpop.f32.mrb[10].mxu1 }
 0x105   : > { %v793_v27 = vadd.f32 %v1380_v25, %v1699_v23  ;;  %v809_v28 = vadd.f32 %v1396_v26, %v1699_v23  ;;  %v584_v29 = vpop.f32.mrb[11].mxu0  ;;  %v648_v30 = vpop.f32.mrb[11].mxu1  ;;  %v824_v33 = vmax.f32 %v792_v18, 0.0  ;;  %v840_v34 = vmax.f32 %v808_v19, 0.0 }
 0x106   : > { %v791_v31 = vadd.f32 %v1699_v23, %v584_v29  ;;  %v807_v32 = vadd.f32 %v1699_v23, %v648_v30  ;;  %v822_v37 = vmax.f32 %v790_v22, 0.0  ;;  %v838_v38 = vmax.f32 %v806_v24, 0.0 }
 0x107   : > { %v825_v35 = vmax.f32 %v793_v27, 0.0  ;;  %v841_v36 = vmax.f32 %v809_v28, 0.0 }
 0x108   : > { %v823_v39 = vmax.f32 %v791_v31, 0.0  ;;  %v839_v40 = vmax.f32 %v807_v32, 0.0 }
 0x109   : > { %v1274_v41 = vpack.c.bf16 %v825_v35, %v824_v33  ;;  %v1314_v42 = vpack.c.bf16 %v841_v36, %v840_v34 }
 0x10a   : > { %v1269_v43 = vpack.c.bf16 %v823_v39, %v822_v37  ;;  %v1309_v44 = vpack.c.bf16 %v839_v40, %v838_v38  ;;  %v1383_v45 = vpop.f32.mrb[12].mxu0  ;;  %v1399_v46 = vpop.f32.mrb[12].mxu1 }
 0x10b   : > { %1330 = vst [vmem:[%s1712_s26 + $0x28] sm:$0xff] %v1274_v41   ;;  %1338 = vst [vmem:[%s1712_s26 + $0x68] sm:$0xff] %v1314_v42   ;;  %v796_v47 = vadd.f32 %v1383_v45, %v1699_v23  ;;  %v812_v48 = vadd.f32 %v1399_v46, %v1699_v23  ;;  %v597_v49 = vpop.f32.mrb[13].mxu0  ;;  %v661_v50 = vpop.f32.mrb[13].mxu1 }
 0x10c   : > { %1329 = vst [vmem:[%s1712_s26 + $0x20] sm:$0xff] %v1269_v43   ;;  %1337 = vst [vmem:[%s1712_s26 + $0x60] sm:$0xff] %v1309_v44   ;;  %v794_v51 = vadd.f32 %v1699_v23, %v597_v49  ;;  %v810_v52 = vadd.f32 %v1699_v23, %v661_v50  ;;  %v1384_v53 = vpop.f32.mrb[14].mxu0  ;;  %v1400_v54 = vpop.f32.mrb[14].mxu1 }
 0x10d   : > { %v797_v55 = vadd.f32 %v1384_v53, %v1699_v23  ;;  %v813_v56 = vadd.f32 %v1400_v54, %v1699_v23  ;;  %v600_v57 = vpop.f32.mrb[15].mxu0  ;;  %v664_v58 = vpop.f32.mrb[15].mxu1  ;;  %v828_v61 = vmax.f32 %v796_v47, 0.0  ;;  %v844_v62 = vmax.f32 %v812_v48, 0.0 }
 0x10e   : > { %v795_v59 = vadd.f32 %v1699_v23, %v600_v57  ;;  %v811_v60 = vadd.f32 %v1699_v23, %v664_v58  ;;  %v826_v1 = vmax.f32 %v794_v51, 0.0  ;;  %v842_v2 = vmax.f32 %v810_v52, 0.0 }
 0x10f   : > { %v829_v63 = vmax.f32 %v797_v55, 0.0  ;;  %v845_v0 = vmax.f32 %v813_v56, 0.0 }
 0x110   : > { %v827_v3 = vmax.f32 %v795_v59, 0.0  ;;  %v843_v4 = vmax.f32 %v811_v60, 0.0 }
 0x111   : > { %v1284_v5 = vpack.c.bf16 %v829_v63, %v828_v61  ;;  %v1324_v6 = vpack.c.bf16 %v845_v0, %v844_v62 }
 0x112   : > { %v1279_v23 = vpack.c.bf16 %v827_v3, %v826_v1  ;;  %v1319_v7 = vpack.c.bf16 %v843_v4, %v842_v2 }
 0x113   : > { %1332 = vst [vmem:[%s1712_s26 + $0x38] sm:$0xff] %v1284_v5   ;;  %1340 = vst [vmem:[%s1712_s26 + $0x78] sm:$0xff] %v1324_v6  }
 0x114   : > { %1331 = vst [vmem:[%s1712_s26 + $0x30] sm:$0xff] %v1279_v23   ;;  %1339 = vst [vmem:[%s1712_s26 + $0x70] sm:$0xff] %v1319_v7  }
 0x115   : > { %1500 = shalt.err (!%p1497_p5)
}
 0x116   : > { %s1501_s9 = scalar_lea.hbm %s1755_s15, 2048  ;;  %s1505_s18 = scalar_lea.hbm %s1814_s3, 4096 }
 0x117   : > { %p1502_p6 = scmp.ne.s32.totalorder %s1755_s15, %s1501_s9  ;;  %p1506_p10 = scmp.lt.u32.totalorder %s1755_s15, %s1814_s3 }
 0x118   : > { %p1507_p11 = scmp.lt.u32.totalorder %s1505_s18, %s1501_s9  ;;  %p1509_p13 = scmp.lt.u32.totalorder %s1501_s9, %s1755_s15 }
 0x119   : > { %p1503_p7 = pnand %p1502_p6, %p1631_p4 }
 0x11a   : > { %p1508_p12 = por %p1507_p11, %p1506_p10 }
 0x11b   : > { %p1504_p9 = pneg %p1503_p7 }
 0x11c   : > { %p1510_p0 = por %p1509_p13, %p1508_p12 }
 0x11e   : > { %p1511_p1 = pnand %p1510_p0, %p1504_p9 }
 0x120   : > { %1514 = shalt.err (!%p1511_p1)
}
 0x121   : > { %s1569_s23 = smov 64   ;;  %s1570_s26 = smov 4  }
 0x122   : > { %1409 = dma.vmem_to_hbm [thread:$0]  (%p1631_p4), %s1757_s28, 2048, %s1755_s15, %s1765_s4, %s1569_s23, %s1569_s23, %s1570_s26  }
 0x123 PF: > { %p1415_p2 = scmp.ge.s32.totalorder %s1565_s17, 2  ;;  %s1036_s27 = sand.u32 1, %s1545_s12  }
 0x124   : > { %s1037_s29 = scalar_lea.sflag [#allocation4], %s1036_s27 }
 0x125   : > { %p1412_p3 = pnand %p1415_p2, %p1638_p8 }
 0x127   : > { %1540 = dma.done.wait (!%p1412_p3), %s1037_s29, 2048  }
 0x128   : > { %1542 = vsyncadd (!%p1412_p3), %s1037_s29, 4294965248  ;;  %s16_s17 = sadd.s32 1, %s1565_s17   ;;  %s1817_s12 = smov %s1549_s13 }
 0x129   : > { %p13_p5 = scmp.ge.s32.totalorder %s16_s17, 4   ;;  %s1818_s13 = smov %s1553_s14 }
 0x12a   : > { %s1819_s14 = smov %s1644_s25  ;;  %s1820_s15 = smov %s1561_s16 }
 0x12b   : > { %s1821_s16 = smov %s1823_s20  ;;  %15 = sbr.rel (!%p13_p5) target bundleno = 4 (0x4), region = 81 }
 0x132   :  { %1042 = vsyncpa [#allocation4], 1 }
 0x133   :  { %1044 = vsyncpa [#allocation4 + $0x1], 1 }

</bundles_post_ra>
